<compile_context>
chip_gen: v7x
topology: tpu7x:2x2x1
jax: 0.10.0
libtpu: 0.0.40
codegen_flags: <defaults>
</compile_context>

<pallas_src>
import jax
import jax.numpy as jnp
from jax.experimental import pallas as pl
from jax.experimental.pallas import tpu as pltpu


# ------------------------------ Pallas kernels -------------------------------

def _kron_kernel(mt_ref, x_ref, o_ref):
    """out = x_flat @ kron(A_row, A_col)^T  for one channel tile."""
    o_ref[...] = jnp.dot(
        x_ref[...], mt_ref[...],
        preferred_element_type=jnp.float32).astype(o_ref.dtype)


def _factored_kernel(pt_ref, ut_ref, x_ref, o_ref):
    """out = (x_flat @ kron(P_r,P_c)^T) @ kron(U_r,U_c)^T  (rank-HW/4 form)."""
    pooled = jnp.dot(x_ref[...], pt_ref[...],
                     preferred_element_type=jnp.float32)
    o_ref[...] = jnp.dot(
        pooled.astype(ut_ref.dtype), ut_ref[...],
        preferred_element_type=jnp.float32).astype(o_ref.dtype)


# --------------------------- interpolation factors ---------------------------

def _pool_upsample_factors(n):
    """P: (n/2, n) adjacent-pair mean.  U: (n, n/2) bilinear upsample back to
    n (align_corners=False; negative source coords clamped to 0, as PyTorch)."""
    m = n // 2
    rows = jnp.arange(m)
    p = jnp.zeros((m, n), jnp.float32)
    p = p.at[rows, 2 * rows].set(0.5)
    p = p.at[rows, 2 * rows + 1].set(0.5)

    o = jnp.arange(n, dtype=jnp.float32)
    src = jnp.maximum((o + 0.5) * (m / n) - 0.5, 0.0)
    i0 = jnp.minimum(jnp.floor(src).astype(jnp.int32), m - 1)
    i1 = jnp.minimum(i0 + 1, m - 1)
    frac = src - i0.astype(jnp.float32)
    u = jnp.zeros((n, m), jnp.float32)
    u = u.at[jnp.arange(n), i0].add(1.0 - frac)
    u = u.at[jnp.arange(n), i1].add(frac)
    return p, u


# ------------------------------- tile picking --------------------------------

def _round_up(x, m):
    return (x + m - 1) // m * m


def _pick_channel_tile(bc, hw, itemsize, budget_bytes=4 << 20, min_steps=8):
    """Channel-tile size (multiple of 8): largest that keeps one x tile under
    budget_bytes while, when there is enough work, leaving >= min_steps grid
    steps (>= 4 per TensorCore on v7x's dual-core chips).  BC is padded up to
    a multiple of the tile, so no divisor search / degenerate TBC=1 cases."""
    max_by_budget = max(8, (budget_bytes // max(hw * itemsize, 1)) // 8 * 8)
    if bc >= min_steps * 8:
        by_steps = _round_up(pl.cdiv(bc, min_steps), 8)
        tbc = min(max_by_budget, by_steps)
    else:
        tbc = min(max_by_budget, _round_up(bc, 8))
    return max(tbc, 8)


# --------------------------------- wrapper ------------------------------------

def dct_layer(x, size=8, *, force_factored=False):
    b, c, h, w = x.shape
    if h % size or w % size:
        raise ValueError(f"DCTLayer requires H, W divisible by size={size}")
    hw = h * w
    bc = b * c

    # Keep bf16 inputs in bf16 (native MXU operand); everything else in f32.
    op_dtype = jnp.bfloat16 if x.dtype == jnp.bfloat16 else jnp.float32
    itemsize = jnp.dtype(op_dtype).itemsize

    p_r, u_r = _pool_upsample_factors(h)
    p_c, u_c = _pool_upsample_factors(w)

    use_kron = (hw * hw * itemsize <= (8 << 20)) and not force_factored

    tbc = _pick_channel_tile(bc, hw, itemsize)
    bc_pad = _round_up(bc, tbc)
    grid = (bc_pad // tbc,)

    xf = x.reshape(bc, hw).astype(op_dtype)
    if bc_pad != bc:
        xf = jnp.pad(xf, ((0, bc_pad - bc), (0, 0)))

    x_spec = pl.BlockSpec((tbc, hw), lambda g: (g, 0))
    o_spec = pl.BlockSpec((tbc, hw), lambda g: (g, 0))

    if use_kron:
        a_row = u_r @ p_r                                    # (H, H)
        a_col = u_c @ p_c                                    # (W, W)
        mt = jnp.kron(a_row, a_col).T.astype(op_dtype)       # (HW, HW)
        mats = (mt,)
        mat_specs = [pl.BlockSpec((hw, hw), lambda g: (0, 0))]
        kernel = _kron_kernel
        mat_bytes = hw * hw * itemsize
        inter_bytes = 0
    else:
        # Rank-(HW/4) factored form for larger spatial sizes.
        # TODO(synk): for very large H*W even the factored kron matrices may
        # not fit VMEM; a fully separable per-axis pipeline would be needed.
        pkt = jnp.kron(p_r, p_c).T.astype(op_dtype)          # (HW, HW/4)
        ukt = jnp.kron(u_r, u_c).T.astype(op_dtype)          # (HW/4, HW)
        mats = (pkt, ukt)
        mat_specs = [pl.BlockSpec((hw, hw // 4), lambda g: (0, 0)),
                     pl.BlockSpec((hw // 4, hw), lambda g: (0, 0))]
        kernel = _factored_kernel
        mat_bytes = 2 * hw * (hw // 4) * itemsize
        inter_bytes = tbc * (hw // 4) * 4

    # Explicit VMEM budget: double-buffered in/out tiles + stationary
    # matrices (+ intermediate) + headroom; capped for v7x's 64 MiB VMEM.
    vmem_bytes = 4 * tbc * hw * itemsize + 2 * mat_bytes + inter_bytes + (4 << 20)
    vmem_limit = int(min(max(vmem_bytes, 32 << 20), 60 << 20))

    out = pl.pallas_call(
        kernel,
        out_shape=jax.ShapeDtypeStruct((bc_pad, hw), x.dtype),
        grid=grid,
        in_specs=[*mat_specs, x_spec],
        out_specs=o_spec,
        compiler_params=pltpu.CompilerParams(
            dimension_semantics=("parallel",),
            vmem_limit_bytes=vmem_limit),
    )(*mats, xf)

    if bc_pad != bc:
        out = out[:bc]
    return out.reshape(b, c, h, w)


# ----------------------------- pure-JAX reference -----------------------------

def _dct_reference(x):
    b, c, h, w = x.shape
    pooled = x.reshape(b, c, h // 2, 2, w // 2, 2).mean(axis=(3, 5))
    hi, wi = h // 2, w // 2
    ys = (jnp.arange(h, dtype=jnp.float32) + 0.5) * (hi / h) - 0.5
    xs = (jnp.arange(w, dtype=jnp.float32) + 0.5) * (wi / w) - 0.5
    y0f, x0f = jnp.floor(ys), jnp.floor(xs)
    wy, wx = ys - y0f, xs - x0f
    y0 = jnp.clip(y0f.astype(jnp.int32), 0, hi - 1)
    y1 = jnp.clip(y0f.astype(jnp.int32) + 1, 0, hi - 1)
    x0 = jnp.clip(x0f.astype(jnp.int32), 0, wi - 1)
    x1 = jnp.clip(x0f.astype(jnp.int32) + 1, 0, wi - 1)
    v00 = pooled[:, :, y0[:, None], x0[None, :]]
    v01 = pooled[:, :, y0[:, None], x1[None, :]]
    v10 = pooled[:, :, y1[:, None], x0[None, :]]
    v11 = pooled[:, :, y1[:, None], x1[None, :]]
    wy_, wx_ = wy[:, None], wx[None, :]
    return (v00 * (1 - wy_) * (1 - wx_) + v01 * (1 - wy_) * wx_
            + v10 * wy_ * (1 - wx_) + v11 * wy_ * wx_)


# ------------------------------------ main -------------------------------------

if __name__ == "__main__":
    key = jax.random.PRNGKey(0)
    x = jax.random.normal(key, (2, 4, 16, 16), jnp.float32)

    fwd = jax.jit(lambda t: dct_layer(t, size=8))
    out = jax.block_until_ready(fwd(x))
    ref = jax.block_until_ready(_dct_reference(x))

    assert out.shape == x.shape, out.shape
    assert bool(jnp.all(jnp.isfinite(out)))
    err = float(jnp.max(jnp.abs(out - ref)))
    assert err < 1e-4, f"kron path mismatch vs reference: {err}"

    # Also exercise the factored (large-H*W) fallback path on the same input.
    out_f = jax.block_until_ready(
        jax.jit(lambda t: dct_layer(t, size=8, force_factored=True))(x))
    err_f = float(jnp.max(jnp.abs(out_f - ref)))
    assert err_f < 1e-4, f"factored path mismatch vs reference: {err_f}"

    print("KERNEL_OK")
</pallas_src>

<mosaic_0001>
module attributes {stable_mosaic.version = 11 : i64} {
  func.func private @main(%arg0: i32) attributes {dimension_semantics = [#tpu.dimension_semantics<core_parallel>], iteration_bounds = array<i64: 2>, tpu.core_type = #tpu.core_type<sc_scalar_subcore>, window_params = []} {
    return
  }
}

module attributes {stable_mosaic.version = 11 : i64} {
  func.func private @main(%arg0: i32) attributes {dimension_semantics = [#tpu.dimension_semantics<core_parallel>], iteration_bounds = array<i64: 2>, tpu.core_type = #tpu.core_type<sc_scalar_subcore>, window_params = []} {
    return
  }
}

module attributes {stable_mosaic.version = 11 : i64} {
  func.func @_kron_kernel(%arg0: i32, %arg1: memref<256x256xf32, #tpu.memory_space<vmem>>, %arg2: memref<8x256xf32, #tpu.memory_space<vmem>>, %arg3: memref<8x256xf32, #tpu.memory_space<vmem>>) attributes {dimension_semantics = [#tpu.dimension_semantics<parallel>], iteration_bounds = array<i64: 1>, scalar_prefetch = 0 : i64, scratch_operands = 0 : i64, tpu.core_type = #tpu.core_type<tc>, window_params = [{pipeline_mode = #tpu.pipeline_mode<synchronous>, transform_indices = @transform_0, window_bounds = array<i64: 256, 256>}, {transform_indices = @transform_1, window_bounds = array<i64: 8, 256>}, {transform_indices = @transform_2, window_bounds = array<i64: 8, 256>}]} {
    %c0 = arith.constant 0 : index
    %c0_0 = arith.constant 0 : index
    %0 = vector.load %arg2[%c0, %c0_0] : memref<8x256xf32, #tpu.memory_space<vmem>>, vector<8x256xf32>
    %c0_1 = arith.constant 0 : index
    %c0_2 = arith.constant 0 : index
    %1 = vector.load %arg1[%c0_1, %c0_2] : memref<256x256xf32, #tpu.memory_space<vmem>>, vector<256x256xf32>
    %cst = arith.constant dense<0.000000e+00> : vector<8x256xf32>
    %2 = tpu.matmul %0, %1, %cst {dimension_numbers = #tpu.dot_dimension_numbers<[1], [0], [0], [1], [0, 0, 1, 1], [], []>} : vector<8x256xf32>, vector<256x256xf32>, vector<8x256xf32> -> vector<8x256xf32>
    %c0_3 = arith.constant 0 : index
    %c0_4 = arith.constant 0 : index
    %3 = vector.load %arg3[%c0_3, %c0_4] : memref<8x256xf32, #tpu.memory_space<vmem>>, vector<8x256xf32>
    tpu.vector_store %arg3[%c0_3, %c0_4], %2 {strides = array<i32>} : memref<8x256xf32, #tpu.memory_space<vmem>>, vector<8x256xf32>,
    return
  }
  func.func @transform_0(%arg0: i32) -> (i32, i32) {
    %c0_i32 = arith.constant 0 : i32
    %c0_i32_0 = arith.constant 0 : i32
    %c0_i32_1 = arith.constant 0 : i32
    return %c0_i32, %c0_i32_0 : i32, i32
  }
  func.func @transform_1(%arg0: i32) -> (i32, i32) {
    %c0_i32 = arith.constant 0 : i32
    %c0_i32_0 = arith.constant 0 : i32
    return %arg0, %c0_i32 : i32, i32
  }
  func.func @transform_2(%arg0: i32) -> (i32, i32) {
    %c0_i32 = arith.constant 0 : i32
    %c0_i32_0 = arith.constant 0 : i32
    return %arg0, %c0_i32 : i32, i32
  }
}

</mosaic_0001>

<bundles_post_ra>
// kernel: _lambda_.1
= control target key start
LH: loop header
LB: loop body
LE: loop exit
PB: predicated region body
PF: predicated region fallthrough
CT: control target
= control target key end

     0   :  { %s437_s0 = inlined_call_operand.vmem [shape: f32[256,256], index: 0, kind: input, shape index: {}]   ;;  %s438_s1 = inlined_call_operand.vmem [shape: f32[8,256], index: 1, kind: input, shape index: {}]   ;;  %s439_s2 = inlined_call_operand.vmem [shape: f32[8,256], index: 2, kind: output, shape index: {}]  }
   0x1   :  { %v14_v0 = vld [vmem:[%s437_s0 + $0x8] sm:$0xff]  ;;  %v16_v1 = vld [vmem:[%s437_s0 + $0x18] sm:$0xff]  ;;  %v13_v2 = vld [vmem:[%s437_s0] sm:$0xff] }
   0x2   :  { %v154_v3 = vpack.c.bf16 %v16_v1, %v14_v0  ;;  %v15_v4 = vld [vmem:[%s437_s0 + $0x10] sm:$0xff]  ;;  %v18_v5 = vld [vmem:[%s437_s0 + $0x28] sm:$0xff]  ;;  %v20_v6 = vld [vmem:[%s437_s0 + $0x38] sm:$0xff] }
   0x3   :  { %v156_v7 = vpack.c.bf16 %v15_v4, %v13_v2  ;;  %v158_v8 = vpack.c.bf16 %v20_v6, %v18_v5  ;;  %v17_v9 = vld [vmem:[%s437_s0 + $0x20] sm:$0xff]  ;;  %v19_v10 = vld [vmem:[%s437_s0 + $0x30] sm:$0xff]  ;;  %v22_v11 = vld [vmem:[%s437_s0 + $0x48] sm:$0xff] }
   0x4   :  { %155 = vmatprep.subr.bf16.mxu0 %v154_v3  ;;  %v24_v12 = vld [vmem:[%s437_s0 + $0x58] sm:$0xff]  ;;  %v160_v13 = vpack.c.bf16 %v19_v10, %v17_v9  ;;  %v21_v15 = vld [vmem:[%s437_s0 + $0x40] sm:$0xff]  ;;  %v23_v16 = vld [vmem:[%s437_s0 + $0x50] sm:$0xff] }
   0x5   :  { %157 = vmatpush1.bf16.msra.mxu0 %v156_v7  ;;  %v162_v14 = vpack.c.bf16 %v24_v12, %v22_v11  ;;  %v26_v17 = vld [vmem:[%s437_s0 + $0x68] sm:$0xff]  ;;  %v28_v18 = vld [vmem:[%s437_s0 + $0x78] sm:$0xff]  ;;  %v164_v19 = vpack.c.bf16 %v23_v16, %v21_v15  ;;  %v25_v21 = vld [vmem:[%s437_s0 + $0x60] sm:$0xff] }
   0x6   :  { %159 = vmatprep.subr.bf16.mxu0 %v158_v8  ;;  %v166_v20 = vpack.c.bf16 %v28_v18, %v26_v17  ;;  %v27_v22 = vld [vmem:[%s437_s0 + $0x70] sm:$0xff]  ;;  %v30_v23 = vld [vmem:[%s437_s0 + $0x88] sm:$0xff]  ;;  %v32_v24 = vld [vmem:[%s437_s0 + $0x98] sm:$0xff] }
   0x7   :  { %v168_v25 = vpack.c.bf16 %v27_v22, %v25_v21  ;;  %v170_v26 = vpack.c.bf16 %v32_v24, %v30_v23  ;;  %v29_v27 = vld [vmem:[%s437_s0 + $0x80] sm:$0xff]  ;;  %v31_v28 = vld [vmem:[%s437_s0 + $0x90] sm:$0xff]  ;;  %v34_v29 = vld [vmem:[%s437_s0 + $0xa8] sm:$0xff] }
   0x8   :  { %v36_v30 = vld [vmem:[%s437_s0 + $0xb8] sm:$0xff]  ;;  %v172_v31 = vpack.c.bf16 %v31_v28, %v29_v27  ;;  %v33_v33 = vld [vmem:[%s437_s0 + $0xa0] sm:$0xff]  ;;  %v35_v34 = vld [vmem:[%s437_s0 + $0xb0] sm:$0xff] }
   0x9   :  { %161 = vmatpush1.bf16.msra.mxu0 %v160_v13  ;;  %v174_v32 = vpack.c.bf16 %v36_v30, %v34_v29  ;;  %v38_v35 = vld [vmem:[%s437_s0 + $0xc8] sm:$0xff]  ;;  %v40_v36 = vld [vmem:[%s437_s0 + $0xd8] sm:$0xff]  ;;  %v176_v37 = vpack.c.bf16 %v35_v34, %v33_v33  ;;  %v37_v39 = vld [vmem:[%s437_s0 + $0xc0] sm:$0xff] }
   0xa   :  { %163 = vmatprep.subr.bf16.mxu0 %v162_v14  ;;  %v178_v38 = vpack.c.bf16 %v40_v36, %v38_v35  ;;  %v39_v40 = vld [vmem:[%s437_s0 + $0xd0] sm:$0xff]  ;;  %v12_v41 = vld [vmem:[%s438_s1 + $0x8] sm:$0xff]  ;;  %v44_v43 = vld [vmem:[%s437_s0 + $0xf8] sm:$0xff] }
   0xb   :  { %v42_v42 = vld [vmem:[%s437_s0 + $0xe8] sm:$0xff]  ;;  %141 = vmatprep.mubr.f32.mxu0 %v12_v41  ;;  %v180_v44 = vpack.c.bf16 %v39_v40, %v37_v39  ;;  %v41_v46 = vld [vmem:[%s437_s0 + $0xe0] sm:$0xff]  ;;  %v43_v47 = vld [vmem:[%s437_s0 + $0xf0] sm:$0xff] }
   0xc   :  { %v182_v45 = vpack.c.bf16 %v44_v43, %v42_v42  ;;  %v46_v48 = vld [vmem:[%s437_s0 + $0x108] sm:$0xff]  ;;  %v48_v49 = vld [vmem:[%s437_s0 + $0x118] sm:$0xff]  ;;  %v184_v50 = vpack.c.bf16 %v43_v47, %v41_v46  ;;  %v45_v52 = vld [vmem:[%s437_s0 + $0x100] sm:$0xff] }
   0xd   :  { %165 = vmatpush1.bf16.msra.mxu0 %v164_v19  ;;  %v186_v51 = vpack.c.bf16 %v48_v49, %v46_v48  ;;  %v47_v53 = vld [vmem:[%s437_s0 + $0x110] sm:$0xff]  ;;  %v50_v54 = vld [vmem:[%s437_s0 + $0x128] sm:$0xff]  ;;  %v52_v55 = vld [vmem:[%s437_s0 + $0x138] sm:$0xff] }
   0xe   :  { %167 = vmatprep.subr.bf16.mxu0 %v166_v20  ;;  %v188_v56 = vpack.c.bf16 %v47_v53, %v45_v52  ;;  %v190_v57 = vpack.c.bf16 %v52_v55, %v50_v54  ;;  %v49_v58 = vld [vmem:[%s437_s0 + $0x120] sm:$0xff]  ;;  %v51_v59 = vld [vmem:[%s437_s0 + $0x130] sm:$0xff]  ;;  %v54_v60 = vld [vmem:[%s437_s0 + $0x148] sm:$0xff] }
   0xf   :  { %v56_v61 = vld [vmem:[%s437_s0 + $0x158] sm:$0xff]  ;;  %v192_v62 = vpack.c.bf16 %v51_v59, %v49_v58  ;;  %v53_v0 = vld [vmem:[%s437_s0 + $0x140] sm:$0xff]  ;;  %v55_v1 = vld [vmem:[%s437_s0 + $0x150] sm:$0xff] }
  0x10   :  { %v194_v63 = vpack.c.bf16 %v56_v61, %v54_v60  ;;  %v58_v2 = vld [vmem:[%s437_s0 + $0x168] sm:$0xff]  ;;  %v60_v3 = vld [vmem:[%s437_s0 + $0x178] sm:$0xff]  ;;  %v196_v4 = vpack.c.bf16 %v55_v1, %v53_v0  ;;  %v57_v6 = vld [vmem:[%s437_s0 + $0x160] sm:$0xff] }
  0x11   :  { %169 = vmatpush1.bf16.msra.mxu0 %v168_v25  ;;  %v198_v5 = vpack.c.bf16 %v60_v3, %v58_v2  ;;  %v59_v7 = vld [vmem:[%s437_s0 + $0x170] sm:$0xff]  ;;  %v62_v8 = vld [vmem:[%s437_s0 + $0x188] sm:$0xff]  ;;  %v64_v9 = vld [vmem:[%s437_s0 + $0x198] sm:$0xff] }
  0x12   :  { %171 = vmatprep.subr.bf16.mxu0 %v170_v26  ;;  %v200_v10 = vpack.c.bf16 %v59_v7, %v57_v6  ;;  %v202_v11 = vpack.c.bf16 %v64_v9, %v62_v8  ;;  %v61_v12 = vld [vmem:[%s437_s0 + $0x180] sm:$0xff]  ;;  %v63_v13 = vld [vmem:[%s437_s0 + $0x190] sm:$0xff]  ;;  %v66_v14 = vld [vmem:[%s437_s0 + $0x1a8] sm:$0xff] }
  0x13   :  { %v68_v15 = vld [vmem:[%s437_s0 + $0x1b8] sm:$0xff]  ;;  %v204_v16 = vpack.c.bf16 %v63_v13, %v61_v12  ;;  %v65_v18 = vld [vmem:[%s437_s0 + $0x1a0] sm:$0xff]  ;;  %v67_v19 = vld [vmem:[%s437_s0 + $0x1b0] sm:$0xff] }
  0x14   :  { %v206_v17 = vpack.c.bf16 %v68_v15, %v66_v14  ;;  %v70_v20 = vld [vmem:[%s437_s0 + $0x1c8] sm:$0xff]  ;;  %v72_v21 = vld [vmem:[%s437_s0 + $0x1d8] sm:$0xff]  ;;  %v208_v22 = vpack.c.bf16 %v67_v19, %v65_v18  ;;  %v69_v24 = vld [vmem:[%s437_s0 + $0x1c0] sm:$0xff] }
  0x15   :  { %173 = vmatpush1.bf16.msra.mxu0 %v172_v31  ;;  %v210_v23 = vpack.c.bf16 %v72_v21, %v70_v20  ;;  %v71_v25 = vld [vmem:[%s437_s0 + $0x1d0] sm:$0xff]  ;;  %v74_v26 = vld [vmem:[%s437_s0 + $0x1e8] sm:$0xff]  ;;  %v76_v27 = vld [vmem:[%s437_s0 + $0x1f8] sm:$0xff] }
  0x16   :  { %175 = vmatprep.subr.bf16.mxu0 %v174_v32  ;;  %v212_v28 = vpack.c.bf16 %v71_v25, %v69_v24  ;;  %v214_v29 = vpack.c.bf16 %v76_v27, %v74_v26  ;;  %v73_v30 = vld [vmem:[%s437_s0 + $0x1e0] sm:$0xff]  ;;  %v75_v31 = vld [vmem:[%s437_s0 + $0x1f0] sm:$0xff] }
  0x17   :  { %v216_v32 = vpack.c.bf16 %v75_v31, %v73_v30  ;;  %v11_v33 = vld [vmem:[%s438_s1] sm:$0xff] }
  0x19   :  { %177 = vmatpush1.bf16.msra.mxu0 %v176_v37 }
  0x1a   :  { %179 = vmatprep.subr.bf16.mxu0 %v178_v38 }
  0x1d   :  { %181 = vmatpush1.bf16.msra.mxu0 %v180_v44 }
  0x1e   :  { %183 = vmatprep.subr.bf16.mxu0 %v182_v45 }
  0x21   :  { %185 = vmatpush1.bf16.msra.mxu0 %v184_v50 }
  0x22   :  { %187 = vmatprep.subr.bf16.mxu0 %v186_v51 }
  0x25   :  { %189 = vmatpush1.bf16.msra.mxu0 %v188_v56 }
  0x26   :  { %191 = vmatprep.subr.bf16.mxu0 %v190_v57 }
  0x29   :  { %193 = vmatpush1.bf16.msra.mxu0 %v192_v62 }
  0x2a   :  { %195 = vmatprep.subr.bf16.mxu0 %v194_v63 }
  0x2d   :  { %197 = vmatpush1.bf16.msra.mxu0 %v196_v4 }
  0x2e   :  { %199 = vmatprep.subr.bf16.mxu0 %v198_v5 }
  0x31   :  { %201 = vmatpush1.bf16.msra.mxu0 %v200_v10 }
  0x32   :  { %203 = vmatprep.subr.bf16.mxu0 %v202_v11 }
  0x35   :  { %205 = vmatpush1.bf16.msra.mxu0 %v204_v16 }
  0x36   :  { %207 = vmatprep.subr.bf16.mxu0 %v206_v17 }
  0x39   :  { %209 = vmatpush1.bf16.msra.mxu0 %v208_v22 }
  0x3a   :  { %211 = vmatprep.subr.bf16.mxu0 %v210_v23 }
  0x3d   :  { %213 = vmatpush1.bf16.msra.mxu0 %v212_v28 }
  0x3e   :  { %215 = vmatprep.subr.bf16.mxu0 %v214_v29 }
  0x41   :  { %217 = vmatpush1.bf16.msra.mxu0 %v216_v32 }
  0x44   :  { %142 = vmatmul.mubr.f32.vlgmr.msra.gmra.mrb[0].mxu0 %v11_v33 }
 0x117   :  { %v143_v34 = vpop.f32.mrb[0].mxu0 }
 0x118   :  { %148 = vst [vmem:[%s439_s2] sm:$0xff] %v143_v34  ;;  %v145_v35 = vpop.f32.mrb[1].mxu0 }
 0x119   :  { %149 = vst [vmem:[%s439_s2 + $0x8] sm:$0xff] %v145_v35 }

</bundles_post_ra>
